<compile_context>
chip_gen: v5e
topology: v5e:2x2
jax: 0.10.0
libtpu: 0.0.40
codegen_flags: <defaults>
</compile_context>

<pallas_src>
import functools

import numpy as np
import jax
import jax.numpy as jnp
from jax.experimental import pallas as pl
from jax.experimental.pallas import tpu as pltpu


# ----------------------------------------------------------------------------- weights
@functools.lru_cache(maxsize=None)
def _weight_matrix(in_size: int, out_size: int) -> np.ndarray:
    """1-D linear interp matrix W (out_size, in_size), PyTorch align_corners=False.

    src = (dst + 0.5) * (in/out) - 0.5 clamped at 0; i0 = floor(src);
    i1 = min(i0 + 1, in - 1); lambda = src - i0.
    Built once per (in, out) pair with NumPy (cached; constant-folds under jit).
    """
    scale = in_size / out_size
    dst = np.arange(out_size, dtype=np.float64)
    src = np.maximum((dst + 0.5) * scale - 0.5, 0.0)
    i0 = np.minimum(np.floor(src).astype(np.int64), in_size - 1)
    i1 = np.minimum(i0 + 1, in_size - 1)
    frac = (src - i0).astype(np.float32)
    w = np.zeros((out_size, in_size), dtype=np.float32)
    rows = np.arange(out_size)
    w[rows, i0] += (1.0 - frac)
    w[rows, i1] += frac
    return w


@functools.lru_cache(maxsize=None)
def _kron_weight_t(h_in: int, w_in: int, h_out: int, w_out: int) -> np.ndarray:
    """kron(Wh, Ww)^T : (H_in*W_in, H_out*W_out), pre-transposed for the matmul kernel."""
    wh = _weight_matrix(h_in, h_out)
    ww = _weight_matrix(w_in, w_out)
    return np.ascontiguousarray(np.kron(wh, ww).T)


# ----------------------------------------------------------------------------- kernels
def _separable_kernel(wh_ref, wwt_ref, x_ref, o_ref):
    """Small-NC path: whole batch resident in VMEM, two batched MXU matmuls.

    wh_ref:  (H_out, H_in)   resident height weights (~2 KiB)
    wwt_ref: (W_in,  W_out)  resident width weights  (~2 KiB)
    x_ref:   (NC, H_in, W_in)
    o_ref:   (NC, H_out, W_out)
    """
    nc, h_in, w_in = x_ref.shape
    h_out = wh_ref.shape[0]
    w_out = wwt_ref.shape[1]

    x = x_ref[...]
    # Width pass:  y[b] = x[b] @ Ww^T      (standard batched-matmul pattern, f32 acc)
    wwt_b = jnp.broadcast_to(wwt_ref[...][None, :, :], (nc, w_in, w_out))
    y = jnp.einsum("nhw,nwo->nho", x, wwt_b, preferred_element_type=jnp.float32)
    # Height pass: z[b] = Wh @ y[b]
    wh_b = jnp.broadcast_to(wh_ref[...][None, :, :], (nc, h_out, h_in))
    z = jnp.einsum("noh,nhw->now", wh_b, y, preferred_element_type=jnp.float32)
    o_ref[...] = z.astype(o_ref.dtype)


def _kron_kernel(kt_ref, x_ref, o_ref):
    """Large-NC path: lane-dense streaming matmul against resident kron(Wh, Ww)^T.

    kt_ref: (H_in*W_in, H_out*W_out)   resident (same block every grid step)
    x_ref:  (BM, H_in*W_in)            streaming input rows
    o_ref:  (BM, H_out*W_out)
    """
    o_ref[...] = jnp.dot(
        x_ref[...], kt_ref[...], preferred_element_type=jnp.float32
    ).astype(o_ref.dtype)


# ----------------------------------------------------------------------------- wrapper
_SMALL_NC_MAX = 256  # below this, separable path wins (kron weight stream >> payload)


def _choose_bm(nc: int, cap: int = 1024) -> int:
    """Largest M-tile <= cap that avoids padding when possible."""
    if nc <= cap:
        return nc
    for bm in range(cap, 7, -8):          # multiples of 8 only
        if nc % bm == 0:
            return bm
    return cap                             # rare: falls back to a padded last block


@functools.partial(jax.jit, static_argnames=("size",))
def _interpolate_bilinear(x: jax.Array, size) -> jax.Array:
    """x: (N, C, H_in, W_in) -> (N, C, H_out, W_out), bilinear, align_corners=False."""
    n, c, h_in, w_in = x.shape
    h_out, w_out = size
    nc = n * c

    if nc <= _SMALL_NC_MAX:
        # --- separable path: whole batch in one kernel invocation, tiny resident weights.
        wh = jnp.asarray(_weight_matrix(h_in, h_out))          # (H_out, H_in)
        wwt = jnp.asarray(_weight_matrix(w_in, w_out).T)       # (W_in,  W_out)
        x3 = x.reshape(nc, h_in, w_in)
        vmem = pl.BlockSpec(memory_space=pltpu.MemorySpace.VMEM)
        out = pl.pallas_call(
            _separable_kernel,
            out_shape=jax.ShapeDtypeStruct((nc, h_out, w_out), x.dtype),
            in_specs=[vmem, vmem, vmem],
            out_specs=vmem,
        )(wh, wwt, x3)
        return out.reshape(n, c, h_out, w_out)

    # --- large-NC path: single lane-dense matmul against kron(Wh, Ww)^T.
    # TODO(synk): for very large spatial sizes (k_in*k_out >> VMEM) this would need a
    # k_in-tiled reduction ("arbitrary" axis + f32 accumulator) instead of a resident K^T.
    k_in, k_out = h_in * w_in, h_out * w_out
    kt = jnp.asarray(_kron_weight_t(h_in, w_in, h_out, w_out))  # (k_in, k_out)
    x_flat = x.reshape(nc, k_in)

    bm = _choose_bm(nc, cap=1024)          # ~12 MiB double-buffered @ bm=1024: fits
    num_blocks = -(-nc // bm)              # v5e/v6e/v7x default scoped VMEM
    nc_pad = num_blocks * bm
    if nc_pad != nc:                       # rare fallback; common case has no pad/slice
        x_flat = jnp.pad(x_flat, ((0, nc_pad - nc), (0, 0)))

    out_flat = pl.pallas_call(
        _kron_kernel,
        out_shape=jax.ShapeDtypeStruct((nc_pad, k_out), x.dtype),
        grid_spec=pltpu.PrefetchScalarGridSpec(
            num_scalar_prefetch=0,
            grid=(num_blocks,),
            in_specs=[
                pl.BlockSpec((k_in, k_out), lambda i: (0, 0)),   # K^T resident in VMEM
                pl.BlockSpec((bm, k_in), lambda i: (i, 0)),      # streaming input rows
            ],
            out_specs=pl.BlockSpec((bm, k_out), lambda i: (i, 0)),
        ),
        compiler_params=pltpu.CompilerParams(
            dimension_semantics=("parallel",),
        ),
    )(kt, x_flat)

    if nc_pad != nc:
        out_flat = out_flat[:nc]
    return out_flat.reshape(n, c, h_out, w_out)


class Interpolate:
    """JAX/Pallas equivalent of the PyTorch Interpolate module (bilinear, align_corners=False)."""

    def __init__(self, size, mode):
        assert mode == "bilinear", "only bilinear mode implemented"
        # TODO(synk): antialias=True downsampling path of F.interpolate not implemented.
        self.size = tuple(int(s) for s in size)
        self.mode = mode

    def __call__(self, x):
        return _interpolate_bilinear(x, self.size)


if __name__ == "__main__":
    key = jax.random.PRNGKey(0)
    N, C, H, W = 2, 4, 16, 16
    x = jax.random.normal(key, (N, C, H, W), dtype=jnp.float32)

    module = Interpolate(size=(32, 32), mode="bilinear")
    out = jax.block_until_ready(module(x))

    assert out.shape == (N, C, 32, 32)
    assert out.dtype == jnp.float32
    assert bool(jnp.all(jnp.isfinite(out)))

    # Reference: plain-JAX separable bilinear resize with the same weight matrices.
    wh = jnp.asarray(_weight_matrix(H, 32))     # (32, 16)
    ww = jnp.asarray(_weight_matrix(W, 32))     # (32, 16)
    ref = jnp.einsum("oh,nchw,pw->ncop", wh, x, ww)
    assert bool(jnp.allclose(out, ref, atol=1e-5, rtol=1e-5))

    print("KERNEL_OK")
</pallas_src>

<mosaic_0001>
module attributes {stable_mosaic.version = 11 : i64} {
  func.func @_separable_kernel(%arg0: memref<32x16xf32, #tpu.memory_space<vmem>>, %arg1: memref<16x32xf32, #tpu.memory_space<vmem>>, %arg2: memref<8x16x16xf32, #tpu.memory_space<vmem>>, %arg3: memref<8x32x32xf32, #tpu.memory_space<vmem>>) attributes {dimension_semantics = [], scalar_prefetch = 0 : i64, scratch_operands = 0 : i64, tpu.core_type = #tpu.core_type<tc>} {
    %c0 = arith.constant 0 : index
    %c0_0 = arith.constant 0 : index
    %c0_1 = arith.constant 0 : index
    %0 = vector.load %arg2[%c0, %c0_0, %c0_1] : memref<8x16x16xf32, #tpu.memory_space<vmem>>, vector<8x16x16xf32>
    %c0_2 = arith.constant 0 : index
    %c0_3 = arith.constant 0 : index
    %1 = vector.load %arg1[%c0_2, %c0_3] : memref<16x32xf32, #tpu.memory_space<vmem>>, vector<16x32xf32>
    %2 = vector.shape_cast %1 : vector<16x32xf32> to vector<1x16x32xf32>
    %3 = vector.shape_cast %2 : vector<1x16x32xf32> to vector<1x16x32xf32>
    %4 = vector.broadcast %3 : vector<1x16x32xf32> to vector<8x16x32xf32>
    "tpu.trace_start"() <{level = 10 : i32, message = "nhw,nwo->nho"}> : () -> ()
    %cst = arith.constant dense<0.000000e+00> : vector<8x16x32xf32>
    %5 = tpu.matmul %0, %4, %cst {dimension_numbers = #tpu.dot_dimension_numbers<[2], [1], [1], [2], [0, 0, 0, 1, 1, 2], [0], [0]>} : vector<8x16x16xf32>, vector<8x16x32xf32>, vector<8x16x32xf32> -> vector<8x16x32xf32>
    "tpu.trace_stop"() : () -> ()
    %c0_4 = arith.constant 0 : index
    %c0_5 = arith.constant 0 : index
    %6 = vector.load %arg0[%c0_4, %c0_5] : memref<32x16xf32, #tpu.memory_space<vmem>>, vector<32x16xf32>
    %7 = vector.shape_cast %6 : vector<32x16xf32> to vector<1x32x16xf32>
    %8 = vector.shape_cast %7 : vector<1x32x16xf32> to vector<1x32x16xf32>
    %9 = vector.broadcast %8 : vector<1x32x16xf32> to vector<8x32x16xf32>
    "tpu.trace_start"() <{level = 10 : i32, message = "noh,nhw->now"}> : () -> ()
    %cst_6 = arith.constant dense<0.000000e+00> : vector<8x32x32xf32>
    %10 = tpu.matmul %9, %5, %cst_6 {dimension_numbers = #tpu.dot_dimension_numbers<[2], [1], [1], [2], [0, 0, 0, 1, 1, 2], [0], [0]>} : vector<8x32x16xf32>, vector<8x16x32xf32>, vector<8x32x32xf32> -> vector<8x32x32xf32>
    "tpu.trace_stop"() : () -> ()
    %c0_7 = arith.constant 0 : index
    %c0_8 = arith.constant 0 : index
    %c0_9 = arith.constant 0 : index
    %11 = vector.load %arg3[%c0_7, %c0_8, %c0_9] : memref<8x32x32xf32, #tpu.memory_space<vmem>>, vector<8x32x32xf32>
    tpu.vector_store %arg3[%c0_7, %c0_8, %c0_9], %10 {strides = array<i32>} : memref<8x32x32xf32, #tpu.memory_space<vmem>>, vector<8x32x32xf32>,
    return
  }
}

</mosaic_0001>

<bundles_post_ra>
// kernel: _interpolate_bilinear.1
= control target key start
LH: loop header
LB: loop body
LE: loop exit
PB: predicated region body
PF: predicated region fallthrough
CT: control target
= control target key end

     0   :  { %8 = vsyncpa [#allocation3], 0  ;;  %s900_s0 = inlined_call_operand.hbm [shape: f32[32,16], index: 0, kind: input, shape index: {}]   ;;  %s901_s1 = inlined_call_operand.hbm [shape: f32[16,32], index: 1, kind: input, shape index: {}]   ;;  %s902_s2 = inlined_call_operand.hbm [shape: f32[8,16,16], index: 2, kind: input, shape index: {}]   ;;  %s903_s3 = inlined_call_operand.hbm [shape: f32[8,32,32], index: 3, kind: output, shape index: {}]  }
   0x1   :  { %9 = vsyncpa [#allocation6], 0 }
   0x2   :  { %10 = vsyncpa [#allocation4], 0  ;;  %s28_s14 = sshll.u32 %s901_s1, 4  ;;  %s770_s15 = smov [#allocation5]   ;;  %s29_s14 = int_to_ptr.hbm [resolvable:$true] %s28_s14 }
   0x3   :  { %s30_s16 = sshll.u32 %s770_s15, 4  ;;  %s15_s19 = sshll.u32 %s900_s0, 4  ;;  %s31_s16 = int_to_ptr.vmem [resolvable:$true] %s30_s16  ;;  %s16_s19 = int_to_ptr.hbm [resolvable:$true] %s15_s19 }
   0x4   :  { %s771_s20 = smov 128   ;;  %s772_s21 = smov 8  }
   0x5   :  { %36 = dma.hbm_to_vmem [thread:$0]  %s29_s14, 256, %s31_s16, [#allocation6], %s771_s20, %s771_s20, %s772_s21  }
   0x6   :  { %s773_s22 = smov [#allocation2]   ;;  %s41_s1 = sshll.u32 %s902_s2, 4  ;;  %s42_s1 = int_to_ptr.hbm [resolvable:$true] %s41_s1 }
   0x7   :  { %s17_s23 = sshll.u32 %s773_s22, 4  ;;  %s774_s0 = smov [#allocation7]   ;;  %s18_s23 = int_to_ptr.vmem [resolvable:$true] %s17_s23 }
   0x8   :  { %23 = dma.hbm_to_vmem [thread:$0]  %s16_s19, 512, %s18_s23, [#allocation3], %s771_s20, %s771_s20, %s772_s21  }
   0x9   :  { %s43_s26 = sshll.u32 %s774_s0, 4  ;;  %s44_s26 = int_to_ptr.vmem [resolvable:$true] %s43_s26 }
   0xa   :  { %49 = dma.hbm_to_vmem [thread:$0]  %s42_s1, 2048, %s44_s26, [#allocation6], %s771_s20, %s771_s20, %s772_s21  }
   0xb   :  { %764 = dma.done.wait [#allocation3], 512  }
   0xc   :  { %765 = vsyncadd [#allocation3], 4294966784 }
   0xd   :  { %766 = dma.done.wait [#allocation6], 2304  }
   0xe   :  { %767 = vsyncadd [#allocation6], 4294964992  ;;  %v79_v0 = vld [vmem:[#allocation5 + $0x8] sm:$0xff]  ;;  %v78_v1 = vld [vmem:[#allocation5] sm:$0xff]  ;;  %vm80_vm0 = vcmask 130048   ;;  %vm561_vm1 = vcmask 261120  }
   0xf   :  { %159 = vmatpush.msra.mxu2 %v79_v0  ;;  %188 = vmatpush.msra.mxu3 %v79_v0  ;;  %v66_v2 = vld [vmem:[#allocation7 + $0x20] sm:$0xff]  ;;  %v68_v3 = vld [vmem:[#allocation7 + $0x30] sm:$0xff]  ;;  %v67_v6 = vld [vmem:[#allocation7 + $0x28] sm:$0xff]  ;;  %s775_s2 = smov [#allocation8]   ;;  %s600_s30 = sshll.u32 %s903_s3, 4  ;;  %s601_s30 = int_to_ptr.hbm [resolvable:$true] %s600_s30 }
  0x10   :  { %101 = vmatpush.msra.mxu0 %v79_v0  ;;  %130 = vmatpush.msra.mxu1 %v79_v0  ;;  %v62_v4 = vld [vmem:[#allocation7] sm:$0xff]  ;;  %v64_v5 = vld [vmem:[#allocation7 + $0x10] sm:$0xff]  ;;  %v69_v7 = vld [vmem:[#allocation7 + $0x38] sm:$0xff]  ;;  %s598_s27 = sshll.u32 %s775_s2, 4  ;;  %s599_s27 = int_to_ptr.vmem [resolvable:$true] %s598_s27 }
  0x11   :  { %160 = vmatpush.msra.mxu2 %v78_v1  ;;  %189 = vmatpush.msra.mxu3 %v78_v1  ;;  %v63_v8 = vld [vmem:[#allocation7 + $0x8] sm:$0xff]  ;;  %v65_v9 = vld [vmem:[#allocation7 + $0x18] sm:$0xff]  ;;  %v74_v10 = vld [vmem:[#allocation7 + $0x60] sm:$0xff] }
  0x12   :  { %618 = vmatmul.msk.f32.vlgmr.msra.gmra.mxu2 %vm80_vm0, %v66_v2  ;;  %620 = vmatmul.msk.f32.vlgmr.msra.gmra.mxu3 %vm80_vm0, %v68_v3  ;;  %v76_v11 = vld [vmem:[#allocation7 + $0x70] sm:$0xff]  ;;  %v70_v12 = vld [vmem:[#allocation7 + $0x40] sm:$0xff]  ;;  %v75_v14 = vld [vmem:[#allocation7 + $0x68] sm:$0xff] }
  0x13   :  { %102 = vmatpush.msra.mxu0 %v78_v1  ;;  %131 = vmatpush.msra.mxu1 %v78_v1  ;;  %v72_v13 = vld [vmem:[#allocation7 + $0x50] sm:$0xff]  ;;  %v77_v15 = vld [vmem:[#allocation7 + $0x78] sm:$0xff]  ;;  %v71_v16 = vld [vmem:[#allocation7 + $0x48] sm:$0xff] }
  0x14   :  { %614 = vmatmul.msk.f32.vlgmr.msra.gmra.mxu0 %vm80_vm0, %v62_v4  ;;  %616 = vmatmul.msk.f32.vlgmr.msra.gmra.mxu1 %vm80_vm0, %v64_v5  ;;  %v73_v17 = vld [vmem:[#allocation7 + $0x58] sm:$0xff]  ;;  %v313_v24 = vld [vmem:[#allocation2] sm:$0xff]  ;;  %v315_v34 = vld [vmem:[#allocation2 + $0x10] sm:$0xff] }
  0x15   :  { %275 = vmatpush.msrb.mxu2 %v79_v0  ;;  %304 = vmatpush.msrb.mxu3 %v79_v0  ;;  %v314_v29 = vld [vmem:[#allocation2 + $0x8] sm:$0xff]  ;;  %v316_v37 = vld [vmem:[#allocation2 + $0x18] sm:$0xff] }
  0x16   :  { %217 = vmatpush.msrb.mxu0 %v79_v0  ;;  %246 = vmatpush.msrb.mxu1 %v79_v0 }
  0x17   :  { %276 = vmatpush.msrb.mxu2 %v78_v1  ;;  %305 = vmatpush.msrb.mxu3 %v78_v1 }
  0x18   :  { %218 = vmatpush.msrb.mxu0 %v78_v1  ;;  %247 = vmatpush.msrb.mxu1 %v78_v1 }
  0x1a   :  { %619 = vmatmul.msk.f32.gmra.mxu2 %vm80_vm0, %v67_v6  ;;  %621 = vmatmul.msk.f32.gmra.mxu3 %vm80_vm0, %v69_v7 }
  0x1c   :  { %615 = vmatmul.msk.f32.gmra.mxu0 %vm80_vm0, %v63_v8  ;;  %617 = vmatmul.msk.f32.gmra.mxu1 %vm80_vm0, %v65_v9 }
  0x22   :  { %626 = vmatmul.msk.f32.vlgmr.msrb.gmra.mxu2 %vm80_vm0, %v74_v10  ;;  %628 = vmatmul.msk.f32.vlgmr.msrb.gmra.mxu3 %vm80_vm0, %v76_v11 }
  0x24   :  { %622 = vmatmul.msk.f32.vlgmr.msrb.gmra.mxu0 %vm80_vm0, %v70_v12  ;;  %624 = vmatmul.msk.f32.vlgmr.msrb.gmra.mxu1 %vm80_vm0, %v72_v13 }
  0x2a   :  { %627 = vmatmul.msk.f32.gmra.mxu2 %vm80_vm0, %v75_v14  ;;  %629 = vmatmul.msk.f32.gmra.mxu3 %vm80_vm0, %v77_v15 }
  0x2c   :  { %623 = vmatmul.msk.f32.gmra.mxu0 %vm80_vm0, %v71_v16  ;;  %625 = vmatmul.msk.f32.gmra.mxu1 %vm80_vm0, %v73_v17 }
  0x91   :  { %v104_v18 = vpop.f32.mrf.mxu0  ;;  %v133_v19 = vpop.f32.mrf.mxu1 }
  0x95   :  { %v162_v20 = vpop.f32.mrf.mxu2  ;;  %v191_v21 = vpop.f32.mrf.mxu3 }
  0x99   :  { %v107_v22 = vpop.f32.mrf.mxu0  ;;  %v136_v23 = vpop.f32.mrf.mxu1 }
  0x9a   :  { %343 = vmatpush.msra.mxu0 %v107_v22  ;;  %372 = vmatpush.msra.mxu1 %v136_v23 }
  0x9c   :  { %344 = vmatpush.msra.mxu0 %v104_v18  ;;  %373 = vmatpush.msra.mxu1 %v133_v19 }
  0x9d   :  { %v165_v25 = vpop.f32.mrf.mxu2  ;;  %v194_v26 = vpop.f32.mrf.mxu3  ;;  %630 = vmatmul.msk.f32.vlgmr.msra.gmra.mxu0 %vm80_vm0, %v313_v24  ;;  %634 = vmatmul.msk.f32.vlgmr.msra.gmra.mxu1 %vm80_vm0, %v313_v24 }
  0x9e   :  { %401 = vmatpush.msra.mxu2 %v165_v25  ;;  %430 = vmatpush.msra.mxu3 %v194_v26 }
  0xa0   :  { %402 = vmatpush.msra.mxu2 %v162_v20  ;;  %431 = vmatpush.msra.mxu3 %v191_v21 }
  0xa1   :  { %v220_v27 = vpop.f32.mrf.mxu0  ;;  %v249_v28 = vpop.f32.mrf.mxu1  ;;  %638 = vmatmul.msk.f32.vlgmr.msra.gmra.mxu2 %vm80_vm0, %v313_v24  ;;  %642 = vmatmul.msk.f32.vlgmr.msra.gmra.mxu3 %vm80_vm0, %v313_v24 }
  0xa5   :  { %v278_v30 = vpop.f32.mrf.mxu2  ;;  %v307_v31 = vpop.f32.mrf.mxu3  ;;  %631 = vmatmul.msk.f32.gmra.mxu0 %vm80_vm0, %v314_v29  ;;  %635 = vmatmul.msk.f32.gmra.mxu1 %vm80_vm0, %v314_v29 }
  0xa9   :  { %v223_v32 = vpop.f32.mrf.mxu0  ;;  %v252_v33 = vpop.f32.mrf.mxu1  ;;  %639 = vmatmul.msk.f32.gmra.mxu2 %vm80_vm0, %v314_v29  ;;  %643 = vmatmul.msk.f32.gmra.mxu3 %vm80_vm0, %v314_v29 }
  0xaa   :  { %459 = vmatpush.msrb.mxu0 %v223_v32  ;;  %488 = vmatpush.msrb.mxu1 %v252_v33 }
  0xac   :  { %460 = vmatpush.msrb.mxu0 %v220_v27  ;;  %489 = vmatpush.msrb.mxu1 %v249_v28 }
  0xad   :  { %v281_v35 = vpop.f32.mrf.mxu2  ;;  %v310_v36 = vpop.f32.mrf.mxu3  ;;  %632 = vmatmul.msk.f32.gmra.mxu0 %vm80_vm0, %v315_v34  ;;  %636 = vmatmul.msk.f32.gmra.mxu1 %vm80_vm0, %v315_v34 }
  0xae   :  { %517 = vmatpush.msrb.mxu2 %v281_v35  ;;  %546 = vmatpush.msrb.mxu3 %v310_v36 }
  0xb0   :  { %518 = vmatpush.msrb.mxu2 %v278_v30  ;;  %547 = vmatpush.msrb.mxu3 %v307_v31 }
  0xb1   :  { %640 = vmatmul.msk.f32.gmra.mxu2 %vm80_vm0, %v315_v34  ;;  %644 = vmatmul.msk.f32.gmra.mxu3 %vm80_vm0, %v315_v34 }
  0xb5   :  { %633 = vmatmul.msk.f32.gmra.mxu0 %vm80_vm0, %v316_v37  ;;  %637 = vmatmul.msk.f32.gmra.mxu1 %vm80_vm0, %v316_v37 }
  0xb9   :  { %641 = vmatmul.msk.f32.gmra.mxu2 %vm80_vm0, %v316_v37  ;;  %645 = vmatmul.msk.f32.gmra.mxu3 %vm80_vm0, %v316_v37 }
  0xbd   :  { %646 = vmatmul.msk.f32.vlgmr.msrb.gmra.mxu0 %vm80_vm0, %v313_v24  ;;  %650 = vmatmul.msk.f32.vlgmr.msrb.gmra.mxu1 %vm80_vm0, %v313_v24 }
  0xc1   :  { %654 = vmatmul.msk.f32.vlgmr.msrb.gmra.mxu2 %vm80_vm0, %v313_v24  ;;  %658 = vmatmul.msk.f32.vlgmr.msrb.gmra.mxu3 %vm80_vm0, %v313_v24 }
  0xc5   :  { %647 = vmatmul.msk.f32.gmra.mxu0 %vm80_vm0, %v314_v29  ;;  %651 = vmatmul.msk.f32.gmra.mxu1 %vm80_vm0, %v314_v29 }
  0xc9   :  { %655 = vmatmul.msk.f32.gmra.mxu2 %vm80_vm0, %v314_v29  ;;  %659 = vmatmul.msk.f32.gmra.mxu3 %vm80_vm0, %v314_v29 }
  0xcd   :  { %648 = vmatmul.msk.f32.gmra.mxu0 %vm80_vm0, %v315_v34  ;;  %652 = vmatmul.msk.f32.gmra.mxu1 %vm80_vm0, %v315_v34 }
  0xd1   :  { %656 = vmatmul.msk.f32.gmra.mxu2 %vm80_vm0, %v315_v34  ;;  %660 = vmatmul.msk.f32.gmra.mxu3 %vm80_vm0, %v315_v34 }
  0xd5   :  { %649 = vmatmul.msk.f32.gmra.mxu0 %vm80_vm0, %v316_v37  ;;  %653 = vmatmul.msk.f32.gmra.mxu1 %vm80_vm0, %v316_v37 }
  0xd9   :  { %657 = vmatmul.msk.f32.gmra.mxu2 %vm80_vm0, %v316_v37  ;;  %661 = vmatmul.msk.f32.gmra.mxu3 %vm80_vm0, %v316_v37 }
 0x11a   :  { %v346_v38 = vpop.f32.mrf.mxu0  ;;  %v375_v39 = vpop.f32.mrf.mxu1 }
 0x11b   :  { %562 = vst.msk [vmem:[#allocation8] sm:$0xff] %vm561_vm1, %v346_v38 }
 0x11c   :  { %566 = vst.msk [vmem:[#allocation8 + $0x20] sm:$0xff] %vm561_vm1, %v375_v39 }
 0x122   :  { %v349_v40 = vpop.f32.mrf.mxu0  ;;  %v378_v41 = vpop.f32.mrf.mxu1 }
 0x123   :  { %563 = vst.msk [vmem:[#allocation8 + $0x8] sm:$0xff] %vm561_vm1, %v349_v40 }
 0x124   :  { %v404_v42 = vpop.f32.mrf.mxu2  ;;  %v433_v43 = vpop.f32.mrf.mxu3  ;;  %567 = vst.msk [vmem:[#allocation8 + $0x28] sm:$0xff] %vm561_vm1, %v378_v41 }
 0x125   :  { %570 = vst.msk [vmem:[#allocation8 + $0x40] sm:$0xff] %vm561_vm1, %v404_v42 }
 0x126   :  { %574 = vst.msk [vmem:[#allocation8 + $0x60] sm:$0xff] %vm561_vm1, %v433_v43 }
 0x12a   :  { %v352_v44 = vpop.f32.mrf.mxu0  ;;  %v381_v45 = vpop.f32.mrf.mxu1 }
 0x12b   :  { %564 = vst.msk [vmem:[#allocation8 + $0x10] sm:$0xff] %vm561_vm1, %v352_v44 }
 0x12c   :  { %v407_v46 = vpop.f32.mrf.mxu2  ;;  %v436_v47 = vpop.f32.mrf.mxu3  ;;  %568 = vst.msk [vmem:[#allocation8 + $0x30] sm:$0xff] %vm561_vm1, %v381_v45 }
 0x12d   :  { %571 = vst.msk [vmem:[#allocation8 + $0x48] sm:$0xff] %vm561_vm1, %v407_v46 }
 0x12e   :  { %575 = vst.msk [vmem:[#allocation8 + $0x68] sm:$0xff] %vm561_vm1, %v436_v47 }
 0x132   :  { %v355_v48 = vpop.f32.mrf.mxu0  ;;  %v384_v49 = vpop.f32.mrf.mxu1 }
 0x133   :  { %565 = vst.msk [vmem:[#allocation8 + $0x18] sm:$0xff] %vm561_vm1, %v355_v48 }
 0x134   :  { %v410_v50 = vpop.f32.mrf.mxu2  ;;  %v439_v51 = vpop.f32.mrf.mxu3  ;;  %569 = vst.msk [vmem:[#allocation8 + $0x38] sm:$0xff] %vm561_vm1, %v384_v49 }
 0x135   :  { %572 = vst.msk [vmem:[#allocation8 + $0x50] sm:$0xff] %vm561_vm1, %v410_v50 }
 0x136   :  { %576 = vst.msk [vmem:[#allocation8 + $0x70] sm:$0xff] %vm561_vm1, %v439_v51 }
 0x13a   :  { %v462_v52 = vpop.f32.mrf.mxu0  ;;  %v491_v53 = vpop.f32.mrf.mxu1 }
 0x13b   :  { %578 = vst.msk [vmem:[#allocation8 + $0x80] sm:$0xff] %vm561_vm1, %v462_v52 }
 0x13c   :  { %v413_v54 = vpop.f32.mrf.mxu2  ;;  %v442_v55 = vpop.f32.mrf.mxu3  ;;  %582 = vst.msk [vmem:[#allocation8 + $0xa0] sm:$0xff] %vm561_vm1, %v491_v53 }
 0x13d   :  { %573 = vst.msk [vmem:[#allocation8 + $0x58] sm:$0xff] %vm561_vm1, %v413_v54 }
 0x13e   :  { %577 = vst.msk [vmem:[#allocation8 + $0x78] sm:$0xff] %vm561_vm1, %v442_v55 }
 0x142   :  { %v465_v56 = vpop.f32.mrf.mxu0  ;;  %v494_v57 = vpop.f32.mrf.mxu1 }
 0x143   :  { %579 = vst.msk [vmem:[#allocation8 + $0x88] sm:$0xff] %vm561_vm1, %v465_v56 }
 0x144   :  { %v520_v58 = vpop.f32.mrf.mxu2  ;;  %v549_v59 = vpop.f32.mrf.mxu3  ;;  %583 = vst.msk [vmem:[#allocation8 + $0xa8] sm:$0xff] %vm561_vm1, %v494_v57 }
 0x145   :  { %586 = vst.msk [vmem:[#allocation8 + $0xc0] sm:$0xff] %vm561_vm1, %v520_v58 }
 0x146   :  { %590 = vst.msk [vmem:[#allocation8 + $0xe0] sm:$0xff] %vm561_vm1, %v549_v59 }
 0x14a   :  { %v468_v60 = vpop.f32.mrf.mxu0  ;;  %v497_v61 = vpop.f32.mrf.mxu1 }
 0x14b   :  { %580 = vst.msk [vmem:[#allocation8 + $0x90] sm:$0xff] %vm561_vm1, %v468_v60 }
 0x14c   :  { %v523_v62 = vpop.f32.mrf.mxu2  ;;  %v552_v63 = vpop.f32.mrf.mxu3  ;;  %584 = vst.msk [vmem:[#allocation8 + $0xb0] sm:$0xff] %vm561_vm1, %v497_v61 }
 0x14d   :  { %587 = vst.msk [vmem:[#allocation8 + $0xc8] sm:$0xff] %vm561_vm1, %v523_v62 }
 0x14e   :  { %591 = vst.msk [vmem:[#allocation8 + $0xe8] sm:$0xff] %vm561_vm1, %v552_v63 }
 0x152   :  { %v471_v0 = vpop.f32.mrf.mxu0  ;;  %v500_v1 = vpop.f32.mrf.mxu1 }
 0x153   :  { %581 = vst.msk [vmem:[#allocation8 + $0x98] sm:$0xff] %vm561_vm1, %v471_v0 }
 0x154   :  { %v526_v2 = vpop.f32.mrf.mxu2  ;;  %v555_v3 = vpop.f32.mrf.mxu3  ;;  %585 = vst.msk [vmem:[#allocation8 + $0xb8] sm:$0xff] %vm561_vm1, %v500_v1 }
 0x155   :  { %588 = vst.msk [vmem:[#allocation8 + $0xd0] sm:$0xff] %vm561_vm1, %v526_v2 }
 0x156   :  { %592 = vst.msk [vmem:[#allocation8 + $0xf0] sm:$0xff] %vm561_vm1, %v555_v3 }
 0x15c   :  { %v529_v4 = vpop.f32.mrf.mxu2  ;;  %v558_v5 = vpop.f32.mrf.mxu3 }
 0x15d   :  { %589 = vst.msk [vmem:[#allocation8 + $0xd8] sm:$0xff] %vm561_vm1, %v529_v4 }
 0x15e   :  { %593 = vst.msk [vmem:[#allocation8 + $0xf8] sm:$0xff] %vm561_vm1, %v558_v5 }
 0x15f   :  { %606 = dma.vmem_to_hbm [thread:$0]  %s599_s27, 4096, %s601_s30, [#allocation4], %s771_s20, %s771_s20, %s772_s21  }
 0x160   :  { %768 = dma.done.wait [#allocation4], 4096  }
 0x161   :  { %769 = vsyncadd [#allocation4], 4294963200 }
 0x162   :  { %611 = vsyncpa [#allocation3], 1 }
 0x163   :  { %612 = vsyncpa [#allocation6], 1 }
 0x164   :  { %613 = vsyncpa [#allocation4], 1 }

</bundles_post_ra>
